<compile_context>
chip_gen: v6e
topology: v6e:2x2x1
jax: 0.10.0
libtpu: 0.0.40
codegen_flags: <defaults>
</compile_context>

<pallas_src>
import jax
import jax.numpy as jnp
from jax.experimental import pallas as pl
from jax.experimental.pallas import tpu as pltpu


def _linear_kernel(x_ref, p_ref, o_ref):
    # x_ref: (Btile, IN)
    # p_ref: (IN+1, OUT) -- rows [0:IN] hold W^T, last row holds the bias.
    # o_ref: (Btile, OUT)
    n_in = p_ref.shape[0] - 1                 # static (shapes are trace-time)
    wt = p_ref[:n_in, :]                      # (IN, OUT)
    bias = p_ref[n_in:, :]                    # (1, OUT) -- keep 2-D for VPU broadcast
    acc = jnp.dot(x_ref[...], wt, preferred_element_type=jnp.float32)
    o_ref[...] = (acc + bias.astype(jnp.float32)).astype(o_ref.dtype)


def pack_params(w, b):
    """Pack PyTorch-layout W (OUT, IN) and b (OUT,) into one (IN+1, OUT) buffer.

    Call ONCE when parameters are created/updated (PCGrad reuses the same
    params across many task forwards) -- NOT on every forward.
    """
    out_features, in_features = w.shape
    return jnp.concatenate([w.T, b.reshape(1, out_features)], axis=0).astype(w.dtype)


def testnet_forward(x, packed_params, *, batch_tile=1024):
    """y = x @ W^T + b, with W/b pre-packed by `pack_params`.

    The op is launch/DMA-bound: stack all per-task/per-sample PCGrad inputs
    along the batch dim and make ONE call instead of N tiny calls.
    """
    B, IN = x.shape
    OUT = packed_params.shape[1]
    assert packed_params.shape[0] == IN + 1, "packed_params must be (IN+1, OUT)"

    cost = pl.CostEstimate(
        flops=2 * B * IN * OUT,
        transcendentals=0,
        bytes_accessed=4 * (B * IN + (IN + 1) * OUT + B * OUT),
    )

    if B >= 2 * batch_tile and B % batch_tile == 0:
        # Large stacked batch: 1-D grid over the batch (Btile multiple of 8,
        # last dims equal the full array extents so the (8,128) rule is met).
        # "parallel" semantics let v7x shard the axis across its 2 TensorCores
        # and keep the per-step VMEM footprint bounded.
        return pl.pallas_call(
            _linear_kernel,
            out_shape=jax.ShapeDtypeStruct((B, OUT), x.dtype),
            grid=(B // batch_tile,),
            in_specs=[
                pl.BlockSpec((batch_tile, IN), lambda i: (i, 0)),
                pl.BlockSpec((IN + 1, OUT), lambda i: (0, 0)),
            ],
            out_specs=pl.BlockSpec((batch_tile, OUT), lambda i: (i, 0)),
            compiler_params=pltpu.CompilerParams(
                dimension_semantics=("parallel",)),
            cost_estimate=cost,
        )(x, packed_params)

    # Small-batch path: gridless call, whole arrays as single VMEM-resident
    # blocks -- no pipeline prologue/epilogue, no double-buffering, 2 input
    # DMAs + 1 output DMA total.
    return pl.pallas_call(
        _linear_kernel,
        out_shape=jax.ShapeDtypeStruct((B, OUT), x.dtype),
        in_specs=[
            pl.BlockSpec(memory_space=pltpu.MemorySpace.VMEM),
            pl.BlockSpec(memory_space=pltpu.MemorySpace.VMEM),
        ],
        out_specs=pl.BlockSpec(memory_space=pltpu.MemorySpace.VMEM),
        cost_estimate=cost,
    )(x, packed_params)


if __name__ == "__main__":
    key = jax.random.PRNGKey(0)
    kx, kw, kb = jax.random.split(key, 3)

    batch = 2
    in_features = 3
    out_features = 4

    # Deterministic synthetic parameters (PyTorch Linear shapes: W (4,3), b (4,))
    x = jax.random.normal(kx, (batch, in_features), dtype=jnp.float32)
    w = jax.random.normal(kw, (out_features, in_features), dtype=jnp.float32) * 0.5
    b = jax.random.normal(kb, (out_features,), dtype=jnp.float32) * 0.1

    # Pack parameters ONCE (hoisted out of the per-forward path).
    params = jax.block_until_ready(pack_params(w, b))

    y = jax.block_until_ready(testnet_forward(x, params))

    # Sanity check against plain-JAX reference
    y_ref = x @ w.T + b
    assert y.shape == (batch, out_features)
    assert jnp.allclose(y, y_ref, atol=1e-5), "mismatch vs reference"

    print("KERNEL_OK")
</pallas_src>

<mosaic_0001>
module attributes {stable_mosaic.version = 11 : i64} {
  func.func @_linear_kernel(%arg0: memref<2x3xf32, #tpu.memory_space<vmem>>, %arg1: memref<4x4xf32, #tpu.memory_space<vmem>>, %arg2: memref<2x4xf32, #tpu.memory_space<vmem>>) attributes {dimension_semantics = [], scalar_prefetch = 0 : i64, scratch_operands = 0 : i64, tpu.core_type = #tpu.core_type<tc>} {
    %c0 = arith.constant 0 : index
    %c0_0 = arith.constant 0 : index
    %0 = vector.load %arg1[%c0, %c0_0] : memref<4x4xf32, #tpu.memory_space<vmem>>, vector<3x4xf32>
    %c3 = arith.constant 3 : index
    %c0_1 = arith.constant 0 : index
    %1 = vector.load %arg1[%c3, %c0_1] : memref<4x4xf32, #tpu.memory_space<vmem>>, vector<1x4xf32>
    %c0_2 = arith.constant 0 : index
    %c0_3 = arith.constant 0 : index
    %2 = vector.load %arg0[%c0_2, %c0_3] : memref<2x3xf32, #tpu.memory_space<vmem>>, vector<2x3xf32>
    %cst = arith.constant dense<0.000000e+00> : vector<2x4xf32>
    %3 = tpu.matmul %2, %0, %cst {dimension_numbers = #tpu.dot_dimension_numbers<[1], [0], [0], [1], [0, 0, 1, 1], [], []>} : vector<2x3xf32>, vector<3x4xf32>, vector<2x4xf32> -> vector<2x4xf32>
    %4 = vector.broadcast %1 : vector<1x4xf32> to vector<2x4xf32>
    %5 = arith.addf %3, %4 : vector<2x4xf32>
    %c0_4 = arith.constant 0 : index
    %c0_5 = arith.constant 0 : index
    %6 = vector.load %arg2[%c0_4, %c0_5] : memref<2x4xf32, #tpu.memory_space<vmem>>, vector<2x4xf32>
    tpu.vector_store %arg2[%c0_4, %c0_5], %5 {strides = array<i32>} : memref<2x4xf32, #tpu.memory_space<vmem>>, vector<2x4xf32>,
    return
  }
}

</mosaic_0001>

<bundles_post_ra>
// kernel: tpu_custom_call.1
= control target key start
LH: loop header
LB: loop body
LE: loop exit
PB: predicated region body
PF: predicated region fallthrough
CT: control target
= control target key end

     0   :  { %7 = vsyncpa [#allocation3], 0  ;;  %s249_s0 = inlined_call_operand.hbm [shape: f32[2,3], index: 0, kind: input, shape index: {}]   ;;  %s250_s1 = inlined_call_operand.hbm [shape: f32[4,4], index: 1, kind: input, shape index: {}]   ;;  %s251_s2 = inlined_call_operand.hbm [shape: f32[2,4], index: 2, kind: output, shape index: {}]  }
   0x1   :  { %8 = vsyncpa [#allocation6], 0 }
   0x2   :  { %9 = vsyncpa [#allocation4], 0  ;;  %s220_s9 = smov [#allocation2]   ;;  %s221_s11 = smov [#allocation5]  }
   0x3   :  { %s16_s10 = sshll.u32 %s220_s9, 4  ;;  %s26_s12 = sshll.u32 %s221_s11, 4  ;;  %s17_s10 = int_to_ptr.vmem [resolvable:$true] %s16_s10  ;;  %s27_s12 = int_to_ptr.vmem [resolvable:$true] %s26_s12 }
   0x4   :  { %s162_s13 = scalar_lea.vmem %s17_s10, 32  ;;  %p167_p1 = scmp.lt.s32.totalorder %s17_s10, %s17_s10 }
   0x5   :  { %p163_p0 = scmp.ne.s32.totalorder %s17_s10, %s162_s13  ;;  %p168_p2 = scmp.lt.s32.totalorder %s162_s13, %s162_s13 }
   0x7   :  { %p169_p3 = por %p168_p2, %p167_p1 }
   0x9   :  { %p170_p4 = pnand %p169_p3, %p163_p0 }
   0xb   :  { %173 = shalt.err (!%p170_p4)
}
   0xc   :  { %19 = dma.hbm_to_vmem [thread:$0]  %s249_s0, 32, %s17_s10, [#allocation3]  }
   0xd   :  { %s182_s16 = scalar_lea.vmem %s27_s12, 64  ;;  %p187_p6 = scmp.lt.s32.totalorder %s27_s12, %s27_s12 }
   0xe   :  { %p183_p5 = scmp.ne.s32.totalorder %s27_s12, %s182_s16  ;;  %p188_p7 = scmp.lt.s32.totalorder %s182_s16, %s182_s16 }
  0x10   :  { %p189_p8 = por %p188_p7, %p187_p6 }
  0x12   :  { %p190_p9 = pnand %p189_p8, %p183_p5 }
  0x14   :  { %193 = shalt.err (!%p190_p9)
}
  0x15   :  { %29 = dma.hbm_to_vmem [thread:$0]  %s250_s1, 64, %s27_s12, [#allocation6]  }
  0x16   :  { %214 = dma.done.wait [#allocation3], 32  }
  0x17   :  { %215 = vsyncadd [#allocation3], 4294967264 }
  0x18   :  { %216 = dma.done.wait [#allocation6], 64  }
  0x19   :  { %217 = vsyncadd [#allocation6], 4294967232  ;;  %v222_v0 = vmov 0.0   ;;  %vm223_vm0 = vmmov 0   ;;  %vm47_vm1 = vcmask 1042432   ;;  %vm43_vm2 = vcmask 23552  }
  0x1a   :  { %144 = vmatprep.subr.mxu0 %v222_v0  ;;  %146 = vmatprep.mubr.msk.f32.mxu0 %vm223_vm0, %v222_v0  ;;  %v36_v1 = vld [vmem:[#allocation5] sm:$0x7]  ;;  %v38_v2 = vld [vmem:[#allocation2] sm:$0x3]  ;;  %v139_v3 = vld [vmem:[#allocation5 + $0x3] ss:$0 sm:$0xff] }
  0x1b   :  { %145 = vmatpush3.msk.msra.mxu0 %vm47_vm1, %v36_v1  ;;  %s224_s0 = smov [#allocation7]   ;;  %vm121_vm3 = vcmask 25600  }
  0x1c   :  { %147 = vmatmul.mubr.msk.f32.vlgmr.msra.gmra.mxu0 %vm43_vm2, %v38_v2  ;;  %s129_s19 = sshll.u32 %s224_s0, 4  ;;  %s130_s19 = int_to_ptr.vmem [resolvable:$true] %s129_s19 }
  0x1d   :  { %s194_s1 = scalar_lea.vmem %s130_s19, 32  ;;  %p199_p11 = scmp.lt.s32.totalorder %s130_s19, %s130_s19 }
  0x1e   :  { %p195_p10 = scmp.ne.s32.totalorder %s130_s19, %s194_s1  ;;  %p200_p12 = scmp.lt.s32.totalorder %s194_s1, %s194_s1 }
  0x20   :  { %p201_p13 = por %p200_p12, %p199_p11 }
  0x22   :  { %p202_p0 = pnand %p201_p13, %p195_p10 }
  0xdc   :  { %v117_v4 = vpop.f32.mrf.mxu0 }
  0xdd   :  { %v118_v5 = vadd.f32 %v139_v3, %v117_v4 }
  0xde   :  { %v148_v6 = vpop.f32.mrf.mxu0 }
  0xdf   :  { %122 = vst.msk [vmem:[#allocation7] sm:$0x3] %vm121_vm3, %v118_v5 }
  0xe0   :  { %205 = shalt.err (!%p202_p0)
}
  0xe1   :  { %132 = dma.vmem_to_hbm [thread:$0]  %s130_s19, 32, %s251_s2, [#allocation4]  }
  0xe2   :  { %218 = dma.done.wait [#allocation4], 32  }
  0xe3   :  { %219 = vsyncadd [#allocation4], 4294967264 }
  0xe4   :  { %136 = vsyncpa [#allocation3], 1 }
  0xe5   :  { %137 = vsyncpa [#allocation6], 1 }
  0xe6   :  { %138 = vsyncpa [#allocation4], 1 }

</bundles_post_ra>
